<compile_context>
chip_gen: v6e
topology: v6e:2x2x1
jax: 0.10.0
libtpu: 0.0.40
codegen_flags: <defaults>
</compile_context>

<pallas_src>
import functools
import math

import jax
import jax.numpy as jnp
from jax import lax
from jax.experimental import pallas as pl
from jax.experimental.pallas import tpu as pltpu


# ---------------------------------------------------------------------------
# Hardware-aware knobs
# ---------------------------------------------------------------------------
def _device_kind() -> str:
    try:
        return jax.devices()[0].device_kind.lower()
    except Exception:
        return ""


def _vmem_capacity_bytes(kind: str) -> int:
    try:
        return int(pltpu.get_tpu_info().vmem_capacity_bytes)
    except Exception:
        pass
    # v7x has 64 MiB of VMEM per TensorCore; v5e/v6e have 128 MiB.
    return (64 << 20) if "v7" in kind else (128 << 20)


def _largest_divisor_at_most(n: int, cap: int) -> int:
    for d in range(min(n, cap), 0, -1):
        if n % d == 0:
            return d
    return 1


def _pick_head_block(heads: int, d_k: int, mxu_width: int) -> int:
    # Enough heads per grid step that the out-projection contraction (hb * d_k)
    # approaches the MXU width (256 on v6e/v7x, 128 on v5e); cap the static
    # sub-head unroll at 8.
    target = max(1, min(8, mxu_width // max(d_k, 1)))
    return _largest_divisor_at_most(heads, target)


def _pick_q_block(batch: int, seq_q: int) -> int:
    # Single q block for short sequences, but split the q axis so that
    # batch * num_q >= 2 (both v7x TensorCores get work) and the live (tq, Sk)
    # score tile stays bounded for long sequences.  Keep tq a multiple of 8
    # (sublane) or equal to the full sequence.
    if seq_q <= 1024 and (batch >= 2 or seq_q <= 128):
        return seq_q
    for cand in (512, 256, 128, 64, 32, 16, 8):
        if cand < seq_q and seq_q % cand == 0:
            return cand
    return seq_q


def _working_set_bytes(tq, hb, s_k, d_model, d_k, act_bytes=2, out_bytes=4):
    kv = 2 * (hb * s_k * d_k * act_bytes) * 2      # K,V head-block, double-buffered
    qb = (hb * tq * d_k * act_bytes) * 2           # Q block
    msk = (tq * s_k * act_bytes) * 2               # additive mask bias block
    wo = d_model * d_model * act_bytes * 2         # resident Wo (constant index)
    ob = (tq * d_model * out_bytes) * 2            # output block
    acc = tq * d_model * 4                         # f32 accumulator scratch
    ctx = tq * hb * d_k * act_bytes                # bf16 context scratch
    live = 4 * tq * s_k * 4                        # f32 score / exp temporaries
    return kv + qb + msk + wo + ob + acc + ctx + live


# ---------------------------------------------------------------------------
# Kernel: one grid step = (batch b, query-block qi, head-block hi)
# ---------------------------------------------------------------------------
def _mha_attn_kernel(q_ref, k_ref, v_ref, bias_ref, wo_ref, bo_ref,
                     o_ref, acc_ref, ctx_ref, *,
                     hb, d_k, exp_dtype, compute_dtype):
    hi = pl.program_id(2)

    @pl.when(hi == 0)
    def _init():
        acc_ref[...] = jnp.zeros_like(acc_ref)

    # Additive masked_fill bias, upcast once per step (shared by all sub-heads).
    bias = bias_ref[0].astype(jnp.float32)                            # (tq, Sk)

    for i in range(hb):                                               # static unroll
        q = q_ref[0, i]                                               # (tq, d_k) bf16 (pre-scaled)
        k = k_ref[0, i]                                               # (Sk, d_k) bf16
        v = v_ref[0, i]                                               # (Sk, d_k) bf16

        # scores = q @ k^T, bf16 MXU inputs, f32 accumulation.
        s = lax.dot_general(q, k, (((1,), (1,)), ((), ())),
                            preferred_element_type=jnp.float32)       # (tq, Sk)
        s = s + bias

        # Numerically-stable softmax; exponent on the bf16 EUP path on v6e/v7x
        # (exp_dtype=f32 on v5e); reductions and running stats stay f32.
        m = jnp.max(s, axis=-1, keepdims=True)
        p = jnp.exp((s - m).astype(exp_dtype))
        l = jnp.sum(p.astype(jnp.float32), axis=-1, keepdims=True)

        # TODO(synk): attention-probability dropout is identity here (p=0 /
        # eval); training dropout would use pltpu.prng_seed + prng_random_bits.
        ctx = jnp.dot(p.astype(compute_dtype), v,
                      preferred_element_type=jnp.float32)             # (tq, d_k)
        ctx = ctx * pl.reciprocal(l, approx=True)                     # deferred softmax norm
        ctx_ref[:, i * d_k:(i + 1) * d_k] = ctx.astype(compute_dtype)

    # Output projection for this head-block: single matmul with contraction
    # width hb*d_k, accumulated over the head-block grid axis.  wo_ref is the
    # full resident weight (constant index map); dynamic first-axis index.
    acc_ref[...] += jnp.dot(ctx_ref[...], wo_ref[hi],
                            preferred_element_type=jnp.float32)       # (tq, D)

    @pl.when(hi == pl.num_programs(2) - 1)
    def _finalize():
        o_ref[0] = (acc_ref[...] + bo_ref[...]).astype(o_ref.dtype)


# ---------------------------------------------------------------------------
# Wrapper
# ---------------------------------------------------------------------------
def multi_head_attention(query, key, value, mask, params, *, heads: int,
                         compute_dtype=jnp.bfloat16):
    """query: (B, Sq, D); key/value: (B, Sk, D); mask broadcastable to
    (B, 1, Sq, Sk) with 0 = masked out.  Returns (B, Sq, D) in query.dtype."""
    B, Sq, D = query.shape
    Sk = key.shape[1]
    assert D % heads == 0, "model_dimension must be divisible by heads"
    d_k = D // heads
    wq, bq, wk, bk, wv, bv, wo, bo = params          # wX: (D_in, D_out), bX: (1, D)

    kind = _device_kind()
    mxu_width = 128 if any(v in kind for v in ("v2", "v3", "v4", "v5")) else 256
    exp_dtype = compute_dtype if ("v6" in kind or "v7" in kind) else jnp.float32
    vmem_cap = _vmem_capacity_bytes(kind)

    # --- Hoisted Q/K/V projections: one full-width XLA matmul each (done once),
    # head-major bf16 outputs; the 1/sqrt(d_k) scale is folded into Q (in f32).
    def project_heads(x, w, b):
        y = x.astype(jnp.float32) @ w + b                       # (B, S, D) f32
        return y.reshape(x.shape[0], x.shape[1], heads, d_k).transpose(0, 2, 1, 3)

    q_h = (project_heads(query, wq, bq)
           * jnp.float32(1.0 / math.sqrt(d_k))).astype(compute_dtype)   # (B,H,Sq,d_k)
    k_h = project_heads(key, wk, bk).astype(compute_dtype)              # (B,H,Sk,d_k)
    v_h = project_heads(value, wv, bv).astype(compute_dtype)            # (B,H,Sk,d_k)

    # --- Mask -> additive bf16 bias, built once; supports broadcastable masks
    # such as (B,1,1,Sk) padding masks.  (For a fully-masked row this yields
    # near-uniform instead of exactly-uniform weights — matches masked_fill(-1e9)
    # semantics to within exp(-1e9) everywhere a row has >= 1 unmasked entry.)
    mask_b = jnp.broadcast_to(mask, (B, 1, Sq, Sk))[:, 0]
    bias = jnp.where(mask_b == 0, jnp.float32(-1e9),
                     jnp.float32(0.0)).astype(compute_dtype)            # (B, Sq, Sk)

    # --- Tiling: head-blocking for MXU width, megacore-aware q tiling, and
    # shrink-to-fit against the real chip VMEM (v7x = 64 MiB).
    hb = _pick_head_block(heads, d_k, mxu_width)
    tq = _pick_q_block(B, Sq)
    fit_budget = int(0.6 * vmem_cap)
    while _working_set_bytes(tq, hb, Sk, D, d_k) > fit_budget:
        if tq > 128 and tq % 16 == 0:
            tq //= 2
        elif hb > 1:
            hb = _largest_divisor_at_most(heads, hb - 1)
        else:
            break
    # TODO(synk): for very long Sk also tile the K/V axis with online softmax
    # (full flash pattern) so VMEM is independent of Sk and K/V are not
    # re-streamed per q-block.
    n_hblk = heads // hb
    num_q = Sq // tq
    grid = (B, num_q, n_hblk)

    # Output-projection weight in head-block-major rows; resident in VMEM
    # (constant index map => fetched once per call).
    wo_r = wo.reshape(n_hblk, hb * d_k, D).astype(compute_dtype)
    bo_r = bo.reshape(1, D).astype(jnp.float32)

    ws = _working_set_bytes(tq, hb, Sk, D, d_k)
    vmem_limit = int(min(int(0.85 * vmem_cap),
                         max(32 << 20, int(1.5 * ws) + (4 << 20))))

    kernel = functools.partial(_mha_attn_kernel, hb=hb, d_k=d_k,
                               exp_dtype=exp_dtype, compute_dtype=compute_dtype)

    q_spec = pl.BlockSpec((1, hb, tq, d_k), lambda b, qi, hi: (b, hi, qi, 0))
    kv_spec = pl.BlockSpec((1, hb, Sk, d_k), lambda b, qi, hi: (b, hi, 0, 0))
    bias_spec = pl.BlockSpec((1, tq, Sk), lambda b, qi, hi: (b, qi, 0))
    wo_spec = pl.BlockSpec((n_hblk, hb * d_k, D), lambda b, qi, hi: (0, 0, 0))
    bo_spec = pl.BlockSpec((1, D), lambda b, qi, hi: (0, 0))
    out_spec = pl.BlockSpec((1, tq, D), lambda b, qi, hi: (b, qi, 0))

    return pl.pallas_call(
        kernel,
        out_shape=jax.ShapeDtypeStruct((B, Sq, D), query.dtype),
        grid_spec=pltpu.PrefetchScalarGridSpec(
            num_scalar_prefetch=0,
            grid=grid,
            in_specs=[q_spec, kv_spec, kv_spec, bias_spec, wo_spec, bo_spec],
            out_specs=out_spec,
            scratch_shapes=[pltpu.VMEM((tq, D), jnp.float32),
                            pltpu.VMEM((tq, hb * d_k), compute_dtype)],
        ),
        compiler_params=pltpu.CompilerParams(
            dimension_semantics=("parallel", "parallel", "arbitrary"),
            vmem_limit_bytes=vmem_limit),
    )(q_h, k_h, v_h, bias, wo_r, bo_r)


# ---------------------------------------------------------------------------
# Pure-JAX (f32) reference reproducing the PyTorch forward (dropout=identity)
# ---------------------------------------------------------------------------
def _reference(query, key, value, mask, params, *, heads: int):
    B, S, D = query.shape
    d_k = D // heads
    wq, bq, wk, bk, wv, bv, wo, bo = params
    q = query @ wq + bq
    k = key @ wk + bk
    v = value @ wv + bv
    q = q.reshape(B, S, heads, d_k).transpose(0, 2, 1, 3)
    k = k.reshape(B, S, heads, d_k).transpose(0, 2, 1, 3)
    v = v.reshape(B, S, heads, d_k).transpose(0, 2, 1, 3)
    scores = jnp.einsum("bhqd,bhkd->bhqk", q, k) / math.sqrt(d_k)
    scores = jnp.where(mask == 0, -1e9, scores)
    p = jax.nn.softmax(scores, axis=-1)
    x = jnp.einsum("bhqk,bhkd->bhqd", p, v)
    x = x.transpose(0, 2, 1, 3).reshape(B, S, D)
    return x @ wo + bo


if __name__ == "__main__":
    B, S, D, H = 2, 8, 32, 4  # batch, seq, model_dimension, heads

    key_root = jax.random.PRNGKey(0)
    ks = jax.random.split(key_root, 12)

    def linear_params(kw, kb, fan_in):
        bound = 1.0 / math.sqrt(fan_in)
        w = jax.random.uniform(kw, (D, D), jnp.float32, -bound, bound)  # (in, out)
        b = jax.random.uniform(kb, (1, D), jnp.float32, -bound, bound)
        return w, b

    wq, bq = linear_params(ks[0], ks[1], D)
    wk, bk = linear_params(ks[2], ks[3], D)
    wv, bv = linear_params(ks[4], ks[5], D)
    wo, bo = linear_params(ks[6], ks[7], D)
    params = (wq, bq, wk, bk, wv, bv, wo, bo)

    q_in = jax.random.normal(ks[8], (B, S, D), jnp.float32)
    k_in = jax.random.normal(ks[9], (B, S, D), jnp.float32)
    v_in = jax.random.normal(ks[10], (B, S, D), jnp.float32)
    # causal mask, shape (B, 1, S, S), int32 (1 = keep, 0 = masked)
    causal = jnp.tril(jnp.ones((S, S), jnp.int32))
    mask = jnp.broadcast_to(causal[None, None, :, :], (B, 1, S, S))

    out = multi_head_attention(q_in, k_in, v_in, mask, params, heads=H)
    out = jax.block_until_ready(out)

    ref = _reference(q_in, k_in, v_in, mask, params, heads=H)
    assert out.shape == (B, S, D)
    max_err = float(jnp.max(jnp.abs(out - ref)))
    # bf16 MXU inputs (f32 accumulate / f32 softmax stats) -> loosened tolerance.
    assert jnp.allclose(out, ref, atol=5e-2, rtol=5e-2), (
        f"mismatch vs reference (max abs err {max_err})")

    print("KERNEL_OK")
</pallas_src>

<mosaic_0001>
module attributes {stable_mosaic.version = 11 : i64} {
  func.func @_mha_attn_kernel(%arg0: i32, %arg1: i32, %arg2: i32, %arg3: memref<1x4x8x8xbf16, #tpu.memory_space<vmem>>, %arg4: memref<1x4x8x8xbf16, #tpu.memory_space<vmem>>, %arg5: memref<1x4x8x8xbf16, #tpu.memory_space<vmem>>, %arg6: memref<1x8x8xbf16, #tpu.memory_space<vmem>>, %arg7: memref<1x32x32xbf16, #tpu.memory_space<vmem>>, %arg8: memref<1x32xf32, #tpu.memory_space<vmem>>, %arg9: memref<1x8x32xf32, #tpu.memory_space<vmem>>, %arg10: memref<8x32xf32, #tpu.memory_space<vmem>>, %arg11: memref<8x32xbf16, #tpu.memory_space<vmem>>) attributes {dimension_semantics = [#tpu.dimension_semantics<parallel>, #tpu.dimension_semantics<parallel>, #tpu.dimension_semantics<arbitrary>], iteration_bounds = array<i64: 2, 1, 1>, scalar_prefetch = 0 : i64, scratch_operands = 2 : i64, tpu.core_type = #tpu.core_type<tc>, window_params = [{transform_indices = @transform_0, window_bounds = array<i64: 1, 4, 8, 8>}, {transform_indices = @transform_1, window_bounds = array<i64: 1, 4, 8, 8>}, {transform_indices = @transform_2, window_bounds = array<i64: 1, 4, 8, 8>}, {transform_indices = @transform_3, window_bounds = array<i64: 1, 8, 8>}, {pipeline_mode = #tpu.pipeline_mode<synchronous>, transform_indices = @transform_4, window_bounds = array<i64: 1, 32, 32>}, {pipeline_mode = #tpu.pipeline_mode<synchronous>, transform_indices = @transform_5, window_bounds = array<i64: 1, 32>}, {transform_indices = @transform_6, window_bounds = array<i64: 1, 8, 32>}]} {
    %c0_i32 = arith.constant 0 : i32
    %0 = arith.cmpi eq, %arg2, %c0_i32 : i32
    %1 = arith.extui %0 : i1 to i32
    %c0_i32_0 = arith.constant 0 : i32
    %2 = arith.cmpi ne, %1, %c0_i32_0 : i32
    scf.if %2 {
      %cst_79 = arith.constant 0.000000e+00 : f32
      %105 = vector.broadcast %cst_79 : f32 to vector<8x32xf32>
      %c0_80 = arith.constant 0 : index
      %c0_81 = arith.constant 0 : index
      %106 = vector.load %arg10[%c0_80, %c0_81] : memref<8x32xf32, #tpu.memory_space<vmem>>, vector<8x32xf32>
      tpu.vector_store %arg10[%c0_80, %c0_81], %105 {strides = array<i32>} : memref<8x32xf32, #tpu.memory_space<vmem>>, vector<8x32xf32>,
    } else {
    }
    %c0 = arith.constant 0 : index
    %c0_1 = arith.constant 0 : index
    %c0_2 = arith.constant 0 : index
    %3 = vector.load %arg6[%c0, %c0_1, %c0_2] : memref<1x8x8xbf16, #tpu.memory_space<vmem>>, vector<1x8x8xbf16>
    %4 = vector.shape_cast %3 : vector<1x8x8xbf16> to vector<8x8xbf16>
    %5 = arith.extf %4 : vector<8x8xbf16> to vector<8x8xf32>
    %c0_3 = arith.constant 0 : index
    %c0_4 = arith.constant 0 : index
    %c0_5 = arith.constant 0 : index
    %c0_6 = arith.constant 0 : index
    %6 = vector.load %arg3[%c0_3, %c0_4, %c0_5, %c0_6] : memref<1x4x8x8xbf16, #tpu.memory_space<vmem>>, vector<1x1x8x8xbf16>
    %7 = vector.shape_cast %6 : vector<1x1x8x8xbf16> to vector<8x8xbf16>
    %c0_7 = arith.constant 0 : index
    %c0_8 = arith.constant 0 : index
    %c0_9 = arith.constant 0 : index
    %c0_10 = arith.constant 0 : index
    %8 = vector.load %arg4[%c0_7, %c0_8, %c0_9, %c0_10] : memref<1x4x8x8xbf16, #tpu.memory_space<vmem>>, vector<1x1x8x8xbf16>
    %9 = vector.shape_cast %8 : vector<1x1x8x8xbf16> to vector<8x8xbf16>
    %c0_11 = arith.constant 0 : index
    %c0_12 = arith.constant 0 : index
    %c0_13 = arith.constant 0 : index
    %c0_14 = arith.constant 0 : index
    %10 = vector.load %arg5[%c0_11, %c0_12, %c0_13, %c0_14] : memref<1x4x8x8xbf16, #tpu.memory_space<vmem>>, vector<1x1x8x8xbf16>
    %11 = vector.shape_cast %10 : vector<1x1x8x8xbf16> to vector<8x8xbf16>
    %cst = arith.constant dense<0.000000e+00> : vector<8x8xf32>
    %12 = tpu.matmul %7, %9, %cst {dimension_numbers = #tpu.dot_dimension_numbers<[1], [1], [0], [0], [0, 0, 1, 0], [], []>} : vector<8x8xbf16>, vector<8x8xbf16>, vector<8x8xf32> -> vector<8x8xf32>
    %13 = arith.addf %12, %5 : vector<8x8xf32>
    %cst_15 = arith.constant dense<0xFF800000> : vector<8xf32>
    %14 = vector.multi_reduction <maximumf>, %13, %cst_15 [1] : vector<8x8xf32> to vector<8xf32>
    %15 = vector.shape_cast %14 : vector<8xf32> to vector<8x1xf32>
    %16 = vector.broadcast %15 : vector<8x1xf32> to vector<8x8xf32>
    %17 = arith.subf %13, %16 : vector<8x8xf32>
    %18 = math.exp %17 : vector<8x8xf32>
    %cst_16 = arith.constant dense<0.000000e+00> : vector<8xf32>
    %19 = vector.multi_reduction <add>, %18, %cst_16 [1] : vector<8x8xf32> to vector<8xf32>
    %20 = vector.shape_cast %19 : vector<8xf32> to vector<8x1xf32>
    %21 = arith.truncf %18 : vector<8x8xf32> to vector<8x8xbf16>
    %cst_17 = arith.constant dense<0.000000e+00> : vector<8x8xf32>
    %22 = tpu.matmul %21, %11, %cst_17 {dimension_numbers = #tpu.dot_dimension_numbers<[1], [0], [0], [1], [0, 0, 1, 1], [], []>} : vector<8x8xbf16>, vector<8x8xbf16>, vector<8x8xf32> -> vector<8x8xf32>
    %23 = tpu.reciprocal %20 {approx = true} : vector<8x1xf32> -> vector<8x1xf32>
    %24 = vector.broadcast %23 : vector<8x1xf32> to vector<8x8xf32>
    %25 = arith.mulf %22, %24 : vector<8x8xf32>
    %26 = arith.truncf %25 : vector<8x8xf32> to vector<8x8xbf16>
    %c0_18 = arith.constant 0 : index
    %c0_19 = arith.constant 0 : index
    %27 = vector.load %arg11[%c0_18, %c0_19] : memref<8x32xbf16, #tpu.memory_space<vmem>>, vector<8x8xbf16>
    tpu.vector_store %arg11[%c0_18, %c0_19], %26 {strides = array<i32>} : memref<8x32xbf16, #tpu.memory_space<vmem>>, vector<8x8xbf16>,
    %c0_20 = arith.constant 0 : index
    %c1 = arith.constant 1 : index
    %c0_21 = arith.constant 0 : index
    %c0_22 = arith.constant 0 : index
    %28 = vector.load %arg3[%c0_20, %c1, %c0_21, %c0_22] : memref<1x4x8x8xbf16, #tpu.memory_space<vmem>>, vector<1x1x8x8xbf16>
    %29 = vector.shape_cast %28 : vector<1x1x8x8xbf16> to vector<8x8xbf16>
    %c0_23 = arith.constant 0 : index
    %c1_24 = arith.constant 1 : index
    %c0_25 = arith.constant 0 : index
    %c0_26 = arith.constant 0 : index
    %30 = vector.load %arg4[%c0_23, %c1_24, %c0_25, %c0_26] : memref<1x4x8x8xbf16, #tpu.memory_space<vmem>>, vector<1x1x8x8xbf16>
    %31 = vector.shape_cast %30 : vector<1x1x8x8xbf16> to vector<8x8xbf16>
    %c0_27 = arith.constant 0 : index
    %c1_28 = arith.constant 1 : index
    %c0_29 = arith.constant 0 : index
    %c0_30 = arith.constant 0 : index
    %32 = vector.load %arg5[%c0_27, %c1_28, %c0_29, %c0_30] : memref<1x4x8x8xbf16, #tpu.memory_space<vmem>>, vector<1x1x8x8xbf16>
    %33 = vector.shape_cast %32 : vector<1x1x8x8xbf16> to vector<8x8xbf16>
    %cst_31 = arith.constant dense<0.000000e+00> : vector<8x8xf32>
    %34 = tpu.matmul %29, %31, %cst_31 {dimension_numbers = #tpu.dot_dimension_numbers<[1], [1], [0], [0], [0, 0, 1, 0], [], []>} : vector<8x8xbf16>, vector<8x8xbf16>, vector<8x8xf32> -> vector<8x8xf32>
    %35 = arith.addf %34, %5 : vector<8x8xf32>
    %cst_32 = arith.constant dense<0xFF800000> : vector<8xf32>
    %36 = vector.multi_reduction <maximumf>, %35, %cst_32 [1] : vector<8x8xf32> to vector<8xf32>
    %37 = vector.shape_cast %36 : vector<8xf32> to vector<8x1xf32>
    %38 = vector.broadcast %37 : vector<8x1xf32> to vector<8x8xf32>
    %39 = arith.subf %35, %38 : vector<8x8xf32>
    %40 = math.exp %39 : vector<8x8xf32>
    %cst_33 = arith.constant dense<0.000000e+00> : vector<8xf32>
    %41 = vector.multi_reduction <add>, %40, %cst_33 [1] : vector<8x8xf32> to vector<8xf32>
    %42 = vector.shape_cast %41 : vector<8xf32> to vector<8x1xf32>
    %43 = arith.truncf %40 : vector<8x8xf32> to vector<8x8xbf16>
    %cst_34 = arith.constant dense<0.000000e+00> : vector<8x8xf32>
    %44 = tpu.matmul %43, %33, %cst_34 {dimension_numbers = #tpu.dot_dimension_numbers<[1], [0], [0], [1], [0, 0, 1, 1], [], []>} : vector<8x8xbf16>, vector<8x8xbf16>, vector<8x8xf32> -> vector<8x8xf32>
    %45 = tpu.reciprocal %42 {approx = true} : vector<8x1xf32> -> vector<8x1xf32>
    %46 = vector.broadcast %45 : vector<8x1xf32> to vector<8x8xf32>
    %47 = arith.mulf %44, %46 : vector<8x8xf32>
    %48 = arith.truncf %47 : vector<8x8xf32> to vector<8x8xbf16>
    %c0_35 = arith.constant 0 : index
    %c8 = arith.constant 8 : index
    %49 = vector.load %arg11[%c0_35, %c8] : memref<8x32xbf16, #tpu.memory_space<vmem>>, vector<8x8xbf16>
    tpu.vector_store %arg11[%c0_35, %c8], %48 {strides = array<i32>} : memref<8x32xbf16, #tpu.memory_space<vmem>>, vector<8x8xbf16>,
    %c0_36 = arith.constant 0 : index
    %c2 = arith.constant 2 : index
    %c0_37 = arith.constant 0 : index
    %c0_38 = arith.constant 0 : index
    %50 = vector.load %arg3[%c0_36, %c2, %c0_37, %c0_38] : memref<1x4x8x8xbf16, #tpu.memory_space<vmem>>, vector<1x1x8x8xbf16>
    %51 = vector.shape_cast %50 : vector<1x1x8x8xbf16> to vector<8x8xbf16>
    %c0_39 = arith.constant 0 : index
    %c2_40 = arith.constant 2 : index
    %c0_41 = arith.constant 0 : index
    %c0_42 = arith.constant 0 : index
    %52 = vector.load %arg4[%c0_39, %c2_40, %c0_41, %c0_42] : memref<1x4x8x8xbf16, #tpu.memory_space<vmem>>, vector<1x1x8x8xbf16>
    %53 = vector.shape_cast %52 : vector<1x1x8x8xbf16> to vector<8x8xbf16>
    %c0_43 = arith.constant 0 : index
    %c2_44 = arith.constant 2 : index
    %c0_45 = arith.constant 0 : index
    %c0_46 = arith.constant 0 : index
    %54 = vector.load %arg5[%c0_43, %c2_44, %c0_45, %c0_46] : memref<1x4x8x8xbf16, #tpu.memory_space<vmem>>, vector<1x1x8x8xbf16>
    %55 = vector.shape_cast %54 : vector<1x1x8x8xbf16> to vector<8x8xbf16>
    %cst_47 = arith.constant dense<0.000000e+00> : vector<8x8xf32>
    %56 = tpu.matmul %51, %53, %cst_47 {dimension_numbers = #tpu.dot_dimension_numbers<[1], [1], [0], [0], [0, 0, 1, 0], [], []>} : vector<8x8xbf16>, vector<8x8xbf16>, vector<8x8xf32> -> vector<8x8xf32>
    %57 = arith.addf %56, %5 : vector<8x8xf32>
    %cst_48 = arith.constant dense<0xFF800000> : vector<8xf32>
    %58 = vector.multi_reduction <maximumf>, %57, %cst_48 [1] : vector<8x8xf32> to vector<8xf32>
    %59 = vector.shape_cast %58 : vector<8xf32> to vector<8x1xf32>
    %60 = vector.broadcast %59 : vector<8x1xf32> to vector<8x8xf32>
    %61 = arith.subf %57, %60 : vector<8x8xf32>
    %62 = math.exp %61 : vector<8x8xf32>
    %cst_49 = arith.constant dense<0.000000e+00> : vector<8xf32>
    %63 = vector.multi_reduction <add>, %62, %cst_49 [1] : vector<8x8xf32> to vector<8xf32>
    %64 = vector.shape_cast %63 : vector<8xf32> to vector<8x1xf32>
    %65 = arith.truncf %62 : vector<8x8xf32> to vector<8x8xbf16>
    %cst_50 = arith.constant dense<0.000000e+00> : vector<8x8xf32>
    %66 = tpu.matmul %65, %55, %cst_50 {dimension_numbers = #tpu.dot_dimension_numbers<[1], [0], [0], [1], [0, 0, 1, 1], [], []>} : vector<8x8xbf16>, vector<8x8xbf16>, vector<8x8xf32> -> vector<8x8xf32>
    %67 = tpu.reciprocal %64 {approx = true} : vector<8x1xf32> -> vector<8x1xf32>
    %68 = vector.broadcast %67 : vector<8x1xf32> to vector<8x8xf32>
    %69 = arith.mulf %66, %68 : vector<8x8xf32>
    %70 = arith.truncf %69 : vector<8x8xf32> to vector<8x8xbf16>
    %c0_51 = arith.constant 0 : index
    %c16 = arith.constant 16 : index
    %71 = vector.load %arg11[%c0_51, %c16] : memref<8x32xbf16, #tpu.memory_space<vmem>>, vector<8x8xbf16>
    tpu.vector_store %arg11[%c0_51, %c16], %70 {strides = array<i32>} : memref<8x32xbf16, #tpu.memory_space<vmem>>, vector<8x8xbf16>,
    %c0_52 = arith.constant 0 : index
    %c3 = arith.constant 3 : index
    %c0_53 = arith.constant 0 : index
    %c0_54 = arith.constant 0 : index
    %72 = vector.load %arg3[%c0_52, %c3, %c0_53, %c0_54] : memref<1x4x8x8xbf16, #tpu.memory_space<vmem>>, vector<1x1x8x8xbf16>
    %73 = vector.shape_cast %72 : vector<1x1x8x8xbf16> to vector<8x8xbf16>
    %c0_55 = arith.constant 0 : index
    %c3_56 = arith.constant 3 : index
    %c0_57 = arith.constant 0 : index
    %c0_58 = arith.constant 0 : index
    %74 = vector.load %arg4[%c0_55, %c3_56, %c0_57, %c0_58] : memref<1x4x8x8xbf16, #tpu.memory_space<vmem>>, vector<1x1x8x8xbf16>
    %75 = vector.shape_cast %74 : vector<1x1x8x8xbf16> to vector<8x8xbf16>
    %c0_59 = arith.constant 0 : index
    %c3_60 = arith.constant 3 : index
    %c0_61 = arith.constant 0 : index
    %c0_62 = arith.constant 0 : index
    %76 = vector.load %arg5[%c0_59, %c3_60, %c0_61, %c0_62] : memref<1x4x8x8xbf16, #tpu.memory_space<vmem>>, vector<1x1x8x8xbf16>
    %77 = vector.shape_cast %76 : vector<1x1x8x8xbf16> to vector<8x8xbf16>
    %cst_63 = arith.constant dense<0.000000e+00> : vector<8x8xf32>
    %78 = tpu.matmul %73, %75, %cst_63 {dimension_numbers = #tpu.dot_dimension_numbers<[1], [1], [0], [0], [0, 0, 1, 0], [], []>} : vector<8x8xbf16>, vector<8x8xbf16>, vector<8x8xf32> -> vector<8x8xf32>
    %79 = arith.addf %78, %5 : vector<8x8xf32>
    %cst_64 = arith.constant dense<0xFF800000> : vector<8xf32>
    %80 = vector.multi_reduction <maximumf>, %79, %cst_64 [1] : vector<8x8xf32> to vector<8xf32>
    %81 = vector.shape_cast %80 : vector<8xf32> to vector<8x1xf32>
    %82 = vector.broadcast %81 : vector<8x1xf32> to vector<8x8xf32>
    %83 = arith.subf %79, %82 : vector<8x8xf32>
    %84 = math.exp %83 : vector<8x8xf32>
    %cst_65 = arith.constant dense<0.000000e+00> : vector<8xf32>
    %85 = vector.multi_reduction <add>, %84, %cst_65 [1] : vector<8x8xf32> to vector<8xf32>
    %86 = vector.shape_cast %85 : vector<8xf32> to vector<8x1xf32>
    %87 = arith.truncf %84 : vector<8x8xf32> to vector<8x8xbf16>
    %cst_66 = arith.constant dense<0.000000e+00> : vector<8x8xf32>
    %88 = tpu.matmul %87, %77, %cst_66 {dimension_numbers = #tpu.dot_dimension_numbers<[1], [0], [0], [1], [0, 0, 1, 1], [], []>} : vector<8x8xbf16>, vector<8x8xbf16>, vector<8x8xf32> -> vector<8x8xf32>
    %89 = tpu.reciprocal %86 {approx = true} : vector<8x1xf32> -> vector<8x1xf32>
    %90 = vector.broadcast %89 : vector<8x1xf32> to vector<8x8xf32>
    %91 = arith.mulf %88, %90 : vector<8x8xf32>
    %92 = arith.truncf %91 : vector<8x8xf32> to vector<8x8xbf16>
    %c0_67 = arith.constant 0 : index
    %c24 = arith.constant 24 : index
    %93 = vector.load %arg11[%c0_67, %c24] : memref<8x32xbf16, #tpu.memory_space<vmem>>, vector<8x8xbf16>
    tpu.vector_store %arg11[%c0_67, %c24], %92 {strides = array<i32>} : memref<8x32xbf16, #tpu.memory_space<vmem>>, vector<8x8xbf16>,
    %c0_68 = arith.constant 0 : index
    %c0_69 = arith.constant 0 : index
    %94 = vector.load %arg10[%c0_68, %c0_69] : memref<8x32xf32, #tpu.memory_space<vmem>>, vector<8x32xf32>
    %c0_70 = arith.constant 0 : index
    %c0_71 = arith.constant 0 : index
    %95 = vector.load %arg11[%c0_70, %c0_71] : memref<8x32xbf16, #tpu.memory_space<vmem>>, vector<8x32xbf16>
    %96 = arith.index_cast %arg2 : i32 to index
    %c0_72 = arith.constant 0 : index
    %c0_73 = arith.constant 0 : index
    %97 = vector.load %arg7[%96, %c0_72, %c0_73] : memref<1x32x32xbf16, #tpu.memory_space<vmem>>, vector<1x32x32xbf16>
    %98 = vector.shape_cast %97 : vector<1x32x32xbf16> to vector<32x32xbf16>
    %cst_74 = arith.constant dense<0.000000e+00> : vector<8x32xf32>
    %99 = tpu.matmul %95, %98, %cst_74 {dimension_numbers = #tpu.dot_dimension_numbers<[1], [0], [0], [1], [0, 0, 1, 1], [], []>} : vector<8x32xbf16>, vector<32x32xbf16>, vector<8x32xf32> -> vector<8x32xf32>
    %100 = arith.addf %94, %99 : vector<8x32xf32>
    %c0_75 = arith.constant 0 : index
    %c0_76 = arith.constant 0 : index
    %101 = vector.load %arg10[%c0_75, %c0_76] : memref<8x32xf32, #tpu.memory_space<vmem>>, vector<8x32xf32>
    tpu.vector_store %arg10[%c0_75, %c0_76], %100 {strides = array<i32>} : memref<8x32xf32, #tpu.memory_space<vmem>>, vector<8x32xf32>,
    %c0_i32_77 = arith.constant 0 : i32
    %102 = arith.cmpi eq, %arg2, %c0_i32_77 : i32
    %103 = arith.extui %102 : i1 to i32
    %c0_i32_78 = arith.constant 0 : i32
    %104 = arith.cmpi ne, %103, %c0_i32_78 : i32
    scf.if %104 {
      %c0_79 = arith.constant 0 : index
      %c0_80 = arith.constant 0 : index
      %105 = vector.load %arg10[%c0_79, %c0_80] : memref<8x32xf32, #tpu.memory_space<vmem>>, vector<8x32xf32>
      %c0_81 = arith.constant 0 : index
      %c0_82 = arith.constant 0 : index
      %106 = vector.load %arg8[%c0_81, %c0_82] : memref<1x32xf32, #tpu.memory_space<vmem>>, vector<1x32xf32>
      %107 = vector.broadcast %106 : vector<1x32xf32> to vector<8x32xf32>
      %108 = arith.addf %105, %107 : vector<8x32xf32>
      %c0_83 = arith.constant 0 : index
      %c0_84 = arith.constant 0 : index
      %c0_85 = arith.constant 0 : index
      %109 = vector.load %arg9[%c0_83, %c0_84, %c0_85] : memref<1x8x32xf32, #tpu.memory_space<vmem>>, vector<1x8x32xf32>
      %110 = vector.shape_cast %109 : vector<1x8x32xf32> to vector<8x32xf32>
      %111 = vector.shape_cast %108 : vector<8x32xf32> to vector<1x8x32xf32>
      tpu.vector_store %arg9[%c0_83, %c0_84, %c0_85], %111 {strides = array<i32>} : memref<1x8x32xf32, #tpu.memory_space<vmem>>, vector<1x8x32xf32>,
    } else {
    }
    return
  }
  func.func @transform_0(%arg0: i32, %arg1: i32, %arg2: i32) -> (i32, i32, i32, i32) {
    %c0_i32 = arith.constant 0 : i32
    %c0_i32_0 = arith.constant 0 : i32
    return %arg0, %arg2, %arg1, %c0_i32 : i32, i32, i32, i32
  }
  func.func @transform_1(%arg0: i32, %arg1: i32, %arg2: i32) -> (i32, i32, i32, i32) {
    %c0_i32 = arith.constant 0 : i32
    %c0_i32_0 = arith.constant 0 : i32
    %c0_i32_1 = arith.constant 0 : i32
    return %arg0, %arg2, %c0_i32, %c0_i32_0 : i32, i32, i32, i32
  }
  func.func @transform_2(%arg0: i32, %arg1: i32, %arg2: i32) -> (i32, i32, i32, i32) {
    %c0_i32 = arith.constant 0 : i32
    %c0_i32_0 = arith.constant 0 : i32
    %c0_i32_1 = arith.constant 0 : i32
    return %arg0, %arg2, %c0_i32, %c0_i32_0 : i32, i32, i32, i32
  }
  func.func @transform_3(%arg0: i32, %arg1: i32, %arg2: i32) -> (i32, i32, i32) {
    %c0_i32 = arith.constant 0 : i32
    %c0_i32_0 = arith.constant 0 : i32
    return %arg0, %arg1, %c0_i32 : i32, i32, i32
  }
  func.func @transform_4(%arg0: i32, %arg1: i32, %arg2: i32) -> (i32, i32, i32) {
    %c0_i32 = arith.constant 0 : i32
    %c0_i32_0 = arith.constant 0 : i32
    %c0_i32_1 = arith.constant 0 : i32
    %c0_i32_2 = arith.constant 0 : i32
    return %c0_i32, %c0_i32_0, %c0_i32_1 : i32, i32, i32
  }
  func.func @transform_5(%arg0: i32, %arg1: i32, %arg2: i32) -> (i32, i32) {
    %c0_i32 = arith.constant 0 : i32
    %c0_i32_0 = arith.constant 0 : i32
    %c0_i32_1 = arith.constant 0 : i32
    return %c0_i32, %c0_i32_0 : i32, i32
  }
  func.func @transform_6(%arg0: i32, %arg1: i32, %arg2: i32) -> (i32, i32, i32) {
    %c0_i32 = arith.constant 0 : i32
    %c0_i32_0 = arith.constant 0 : i32
    return %arg0, %arg1, %c0_i32 : i32, i32, i32
  }
}

</mosaic_0001>

<bundles_post_ra>
// kernel: tpu_custom_call.1
= control target key start
LH: loop header
LB: loop body
LE: loop exit
PB: predicated region body
PF: predicated region fallthrough
CT: control target
= control target key end

     0   :  { %s2040_s0 = inlined_call_operand.hbm [shape: bf16[2,4,8,8], index: 0, kind: input, shape index: {}]   ;;  %s2041_s1 = inlined_call_operand.hbm [shape: bf16[2,4,8,8], index: 1, kind: input, shape index: {}]   ;;  %s2042_s2 = inlined_call_operand.hbm [shape: bf16[2,4,8,8], index: 2, kind: input, shape index: {}]   ;;  %s2043_s3 = inlined_call_operand.hbm [shape: bf16[2,8,8], index: 3, kind: input, shape index: {}]   ;;  %s2044_s4 = inlined_call_operand.hbm [shape: bf16[1,32,32], index: 4, kind: input, shape index: {}]   ;;  %s2045_s5 = inlined_call_operand.vmem [shape: f32[1,32], index: 5, kind: input, shape index: {}]   ;;  %s2046_s6 = inlined_call_operand.hbm [shape: f32[2,8,32], index: 6, kind: output, shape index: {}]  }
   0x1   :  { %2058 = sst [smem:[#allocation24_spill]] %s2041_s1 }
   0x2   :  { %2059 = sst [smem:[#allocation25_spill]] %s2044_s4 }
   0x3   :  { %2060 = sst [smem:[#allocation26_spill]] %s2046_s6 }
   0x4   :  { %11 = vsyncpa [#allocation5], 0 }
   0x5   :  { %13 = vsyncpa [#allocation5 + $0x1], 0 }
   0x6   :  { %14 = vsyncpa [#allocation8], 0 }
   0x7   :  { %16 = vsyncpa [#allocation8 + $0x1], 0 }
   0x8   :  { %17 = vsyncpa [#allocation11], 0 }
   0x9   :  { %19 = vsyncpa [#allocation11 + $0x1], 0 }
   0xa   :  { %20 = vsyncpa [#allocation6], 0 }
   0xb   :  { %22 = vsyncpa [#allocation6 + $0x1], 0  ;;  %s1708_s21 = smov 0   ;;  %s1710_s22 = smov 0  }
   0xc   :  { %s1712_s23 = smov 0   ;;  %s1714_s24 = smov 0  }
   0xd   :  { %s1716_s25 = smov 0   ;;  %s1718_s26 = smov 0  }
   0xe LB: > { %2061 = sst [smem:[#allocation19_spill]] %s1638_s21  ;;  %s1739_s27 = sadd.s32 4294967295, %s1658_s26   ;;  %s1658_s26 = sphi %s1718_s26, %s28_s26   ;;  %s1654_s25 = sphi %s1716_s25, %s2094_s25   ;;  %s1650_s24 = sphi %s1714_s24, %s2093_s24   ;;  %s1646_s23 = sphi %s1712_s23, %s2089_s23   ;;  %s1642_s22 = sphi %s1710_s22, %s2092_s22   ;;  %s1638_s21 = sphi %s1708_s21, %s2091_s21  }
   0xf   : > { %2062 = sst [smem:[#allocation20_spill]] %s1646_s23  ;;  %s1184_s28 = sadd.s32 4294967294, %s1658_s26  }
  0x10   : > { %p65_p0 = scmp.ne.s32.totalorder %s1646_s23, %s1642_s22  ;;  %p66_p1 = scmp.eq.s32.totalorder %s1658_s26, 0 }
  0x11   : > { %p71_p2 = scmp.ne.s32.totalorder %s1642_s22, %s1638_s21  ;;  %p2047_p3 = scmp.eq.s32.totalorder %s1739_s27, 0 }
  0x12   : > { %p223_p4 = scmp.eq.s32.totalorder %s1739_s27, 1  ;;  %p1750_p5 = por %p66_p1, %p65_p0 }
  0x13   : > { %p229_p6 = scmp.eq.s32.totalorder %s1184_s28, 1  ;;  %p1756_p7 = por %p2047_p3, %p71_p2 }
  0x14   : > { %p1760_p8 = por %p223_p4, %p65_p0  ;;  %p1185_p10 = scmp.ge.s32.totalorder %s1658_s26, 1 }
  0x15   : > { %p1764_p9 = por %p229_p6, %p71_p2  ;;  %p236_p11 = scmp.lt.s32.totalorder %s1658_s26, 3 }
  0x16   : > { %s1660_s11 = smov [#allocation12]   ;;  %s47_s14 = sadd.s32 1, %s1654_s25 }
  0x17   : > { %s2066_s9 = scalar_select %p1764_p9, 1, 0 }
  0x18   : > { %p1770_p12 = pnand %p1185_p10, %p236_p11  ;;  %s248_s12 = sshll.u32 %s1660_s11, 4  ;;  %s249_s12 = int_to_ptr.vmem [resolvable:$true] %s248_s12 }
  0x19   : > { %2067 = sst [smem:[#allocation21_spill]] %s2066_s9  ;;  %s1786_s15 = sand.u32 1, %s1646_s23  }
  0x1a   : > { %p1329_p13 = pneg %p1770_p12  ;;  %p1788_p2 = scmp.ge.s32.totalorder %s47_s14, 2 }
  0x1b   : > { %s1439_s17 = scalar_lea.vmem %s249_s12, 256  ;;  %p1447_p1 = scmp.lt.s32.totalorder %s249_s12, %s249_s12 }
  0x1c   : > { %p1780_p4 = pnand %p1329_p13, %p2047_p3  ;;  %p1440_p10 = scmp.ne.s32.totalorder %s249_s12, %s1439_s17 }
  0x1d   : > { %p1448_p9 = scmp.lt.s32.totalorder %s1439_s17, %s1439_s17 }
  0x1e   : > { %p1430_p6 = pneg %p1780_p4 }
  0x1f   : > { %p1449_p13 = por %p1448_p9, %p1447_p1 }
  0x20   : > { %p1442_p11 = pnand %p1440_p10, %p1430_p6 }
  0x22   : > { %p1443_p0 = pneg %p1442_p11 }
  0x24   : > { %p1450_p3 = pnand %p1449_p13, %p1443_p0 }
  0x26   : > { %1453 = shalt.err (!%p1450_p3)
}
  0x27   : > { %s2048_s18 = smov 64   ;;  %s2050_s19 = smov 4  }
  0x28   : > { %s2071_s4 = sld [smem:[#allocation25_spill]]  ;;  %s2096_s14 = smov (%p1788_p2, %s47_s14), 0 }
  0x29   : > { %2072 = sst [smem:[#allocation22_spill]] %s2096_s14  ;;  %s1807_s11 = sshll.u32 %s1786_s15, 4 }
  0x2a   : > { %s1810_s17 = sshll.u32 %s1654_s25, 8  ;;  %s51_s29 = ssub.s32 %s1654_s25, %s2096_s14 }
  0x2b   : > { %p2073_p3 = scmp.lt.s32.totalorder %s1658_s26, 2  ;;  %p56_p0 = scmp.eq.s32.totalorder %s51_s29, 0 }
  0x2c   : > { %s2075_s16 = sadd.s32 1, %s1646_s23  ;;  %s2077_s1 = sld [smem:[#allocation24_spill]] }
  0x2d   : > { %p1818_p9 = pnand %p2073_p3, %p1750_p5  ;;  %s1663_s29 = smov [#allocation7]  }
  0x2e   : > { %1332 = dma.hbm_to_vmem [thread:$0]  (!%p1780_p4), %s2071_s4, 256, %s249_s12, [#allocation11], %s2048_s18, %s2048_s18, %s2050_s19  }
  0x2f   : > { %s2054_s12 = sand.u32 1, %s1658_s26   ;;  %s293_s4 = scalar_lea.vmem [#allocation7], %s1807_s11 }
  0x30   : > { %s1826_s20 = scalar_select %p56_p0, %s1646_s23, %s2075_s16  }
  0x31   : > { %s302_s9 = sshll.u32 %s293_s4, 4  ;;  %s1835_s30 = scalar_lea.sflag [#allocation8], %s2054_s12  ;;  %s303_s9 = int_to_ptr.vmem [resolvable:$true] %s302_s9 }
  0x32   : > { %2076 = sst [smem:[#allocation23_spill]] %s1826_s20  ;;  %s301_s19 = scalar_lea.hbm %s2077_s1, %s1810_s17 }
  0x33   : > { %p1456_p5 = pneg %p1818_p9  ;;  %s1467_s14 = scalar_lea.vmem %s303_s9, 256 }
  0x34   : > { %p1468_p1 = scmp.ne.s32.totalorder %s303_s9, %s1467_s14  ;;  %s1472_s16 = sshll.u32 %s1663_s29, 4  ;;  %s1473_s16 = int_to_ptr.vmem [resolvable:$false] %s1472_s16 }
  0x35   : > { %s1474_s20 = scalar_lea.vmem %s1473_s16, 512  ;;  %p1475_p6 = scmp.lt.s32.totalorder %s303_s9, %s1473_s16 }
  0x36   : > { %p1470_p4 = pnand %p1468_p1, %p1456_p5  ;;  %p1476_p10 = scmp.lt.s32.totalorder %s1474_s20, %s1467_s14 }
  0x38   : > { %p1471_p2 = pneg %p1470_p4  ;;  %p1477_p11 = por %p1476_p10, %p1475_p6 }
  0x3a   : > { %p1478_p13 = pnand %p1477_p11, %p1471_p2 }
  0x3c   : > { %1481 = shalt.err (!%p1478_p13)
}
  0x3d   : > { %s2078_s4 = smov 4   ;;  %s2079_s18 = smov 64  }
  0x3e   : > { %1339 = dma.hbm_to_vmem [thread:$0]  (!%p1818_p9), %s301_s19, 256, %s303_s9, %s1835_s30, %s2079_s18, %s2079_s18, %s2078_s4  }
  0x3f   : > { %s278_s12 = scalar_lea.hbm %s2040_s0, %s1810_s17  ;;  %s269_s16 = scalar_lea.vmem [#allocation4], %s1807_s11 }
  0x40   : > { %s279_s14 = sshll.u32 %s269_s16, 4  ;;  %s266_s20 = scalar_lea.sflag [#allocation5], %s1786_s15  ;;  %s280_s14 = int_to_ptr.vmem [resolvable:$true] %s279_s14 }
  0x41   : > { %s1495_s1 = scalar_lea.vmem %s280_s14, 256  ;;  %s1664_s23 = smov [#allocation4]  }
  0x42   : > { %p1496_p3 = scmp.ne.s32.totalorder %s280_s14, %s1495_s1  ;;  %s1500_s21 = sshll.u32 %s1664_s23, 4  ;;  %s1501_s21 = int_to_ptr.vmem [resolvable:$false] %s1500_s21 }
  0x43   : > { %s1502_s6 = scalar_lea.vmem %s1501_s21, 512  ;;  %p1503_p4 = scmp.lt.s32.totalorder %s280_s14, %s1501_s21 }
  0x44   : > { %p1498_p0 = pnand %p1496_p3, %p1456_p5  ;;  %p1504_p2 = scmp.lt.s32.totalorder %s1502_s6, %s1495_s1 }
  0x46   : > { %p1499_p1 = pneg %p1498_p0  ;;  %p1505_p6 = por %p1504_p2, %p1503_p4 }
  0x48   : > { %p1506_p10 = pnand %p1505_p6, %p1499_p1 }
  0x4a   : > { %1509 = shalt.err (!%p1506_p10)
}
  0x4b   : > { %1336 = dma.hbm_to_vmem [thread:$0]  (!%p1818_p9), %s278_s12, 256, %s280_s14, %s266_s20, %s2079_s18, %s2079_s18, %s2078_s4  }
  0x4c   : > { %s324_s23 = scalar_lea.hbm %s2042_s2, %s1810_s17  ;;  %s316_s28 = scalar_lea.vmem [#allocation9], %s1807_s11 }
  0x4d   : > { %s325_s29 = sshll.u32 %s316_s28, 4  ;;  %s1665_s6 = smov [#allocation9]   ;;  %s326_s29 = int_to_ptr.vmem [resolvable:$true] %s325_s29 }
  0x4e   : > { %s1523_s1 = scalar_lea.vmem %s326_s29, 256  ;;  %s1528_s21 = sshll.u32 %s1665_s6, 4  ;;  %s1529_s21 = int_to_ptr.vmem [resolvable:$false] %s1528_s21 }
  0x4f   : > { %p1524_p11 = scmp.ne.s32.totalorder %s326_s29, %s1523_s1  ;;  %s1530_s16 = scalar_lea.vmem %s1529_s21, 512 }
  0x50   : > { %p1531_p0 = scmp.lt.s32.totalorder %s326_s29, %s1529_s21  ;;  %p1532_p1 = scmp.lt.s32.totalorder %s1530_s16, %s1523_s1 }
  0x51   : > { %p1526_p13 = pnand %p1524_p11, %p1456_p5 }
  0x52   : > { %p1533_p4 = por %p1532_p1, %p1531_p0 }
  0x53   : > { %p1527_p3 = pneg %p1526_p13 }
  0x55   : > { %p1534_p2 = pnand %p1533_p4, %p1527_p3 }
  0x57   : > { %1537 = shalt.err (!%p1534_p2)
}
  0x58   : > { %1342 = dma.hbm_to_vmem [thread:$0]  (!%p1818_p9), %s324_s23, 256, %s326_s29, %s1835_s30, %s2079_s18, %s2079_s18, %s2078_s4  }
  0x59   : > { %s1197_s11 = sshll.u32 %s1786_s15, 2  ;;  %s1198_s17 = sshll.u32 %s1654_s25, 6 }
  0x5a   : > { %s345_s20 = scalar_lea.hbm %s2043_s3, %s1198_s17  ;;  %s339_s9 = scalar_lea.vmem [#allocation10], %s1197_s11 }
  0x5b   : > { %s347_s19 = sshll.u32 %s339_s9, 4  ;;  %s2080_s28 = sand.u32 1, %s1658_s26   ;;  %s348_s19 = int_to_ptr.vmem [resolvable:$true] %s347_s19 }
  0x5c   : > { %s336_s1 = scalar_lea.sflag [#allocation11], %s2080_s28  ;;  %s1551_s6 = scalar_lea.vmem %s348_s19, 64 }
  0x5d   : > { %p1552_p6 = scmp.ne.s32.totalorder %s348_s19, %s1551_s6  ;;  %s1666_s21 = smov [#allocation10]  }
  0x5e   : > { %s1556_s16 = sshll.u32 %s1666_s21, 4  ;;  %s1557_s16 = int_to_ptr.vmem [resolvable:$false] %s1556_s16 }
  0x5f   : > { %p1554_p10 = pnand %p1552_p6, %p1456_p5  ;;  %s1558_s15 = scalar_lea.vmem %s1557_s16, 128 }
  0x60   : > { %p1559_p13 = scmp.lt.s32.totalorder %s348_s19, %s1557_s16  ;;  %p1560_p3 = scmp.lt.s32.totalorder %s1558_s15, %s1551_s6 }
  0x61   : > { %p1555_p11 = pneg %p1554_p10 }
  0x62   : > { %p1561_p0 = por %p1560_p3, %p1559_p13 }
  0x64   : > { %p1562_p1 = pnand %p1561_p0, %p1555_p11 }
  0x66   : > { %1565 = shalt.err (!%p1562_p1)
}
  0x67   : > { %1345 = dma.hbm_to_vmem [thread:$0]  (!%p1818_p9), %s345_s20, 64, %s348_s19, %s336_s1  }
  0x68   : > { %356 = sbr.rel (%p1770_p12) target bundleno = 1399 (0x577), region = 44  ;;  %s1891_s30 = sand.u32 (!%p1770_p12), 1, %s1642_s22  }
  0x69   : > { %s1200_s4 = sshll.u32 (!%p1770_p12), %s1891_s30, 4  ;;  %s359_s18 = scalar_lea.sflag (!%p1770_p12), [#allocation5], %s1891_s30 }
  0x6a   : > { %s1895_s23 = scalar_lea.vmem (!%p1770_p12), [#allocation4], %s1200_s4 }
  0x6d   : > { %1617 = dma.done.wait (%p1756_p7), %s359_s18, 256  }
  0x6e   : > { %1619 = vsyncadd (%p1756_p7), %s359_s18, 4294967040  ;;  %s367_s13 = sand.u32 1, %s1739_s27   ;;  %s1902_s29 = scalar_lea.vmem [#allocation7], %s1200_s4 }
  0x6f   : > { %s368_s10 = scalar_lea.sflag [#allocation8], %s367_s13 }
  0x70   : > { %1621 = dma.done.wait (%p1756_p7), %s368_s10, 512  }
  0x71   : > { %1623 = vsyncadd (%p1756_p7), %s368_s10, 4294966784  ;;  %s1203_s11 = sshll.u32 %s1891_s30, 2  ;;  %s1909_s17 = scalar_lea.vmem [#allocation9], %s1200_s4 }
  0x72   : > { %s386_s12 = scalar_lea.sflag [#allocation11], %s367_s13  ;;  %s389_s14 = scalar_lea.vmem [#allocation10], %s1203_s11 }
  0x73   : > { %1625 = dma.done.wait (%p1756_p7), %s386_s12, 64  }
  0x74   : > { %1627 = vsyncadd (%p1756_p7), %s386_s12, 4294967232  ;;  %p2081_p12 = scmp.eq.s32.totalorder %s1739_s27, 0 }
  0x76   : > { %1629 = dma.done.wait (%p2081_p12), [#allocation11], 256   ;;  %p2082_p9 = pmov %p2081_p12 }
  0x77   : > { %v1667_v0 = vmov 0.0   ;;  %vm1668_vm0 = vmmov 0   ;;  %vm452_vm1 = vcmask 64512   ;;  %v450_v1 = vld [vmem:[%s1902_s29] sm:$0xf]  ;;  %vm512_vm2 = vcmask 1043456  }
  0x78   : > { %1631 = vsyncadd (%p2082_p9), [#allocation11], 4294967040  ;;  %1259 = vmatprep.subr.bf16.mxu0 %v1667_v0  ;;  %1261 = vmatprep.mubr.msk.bf16.mxu0 %vm1668_vm0, %v1667_v0  ;;  %v457_v2 = vsel %vm452_vm1, %v450_v1, 0  ;;  %v449_v3 = vld [vmem:[%s1895_s23] sm:$0xf]  ;;  %vm559_vm3 = vcmask 60416  }
  0x79   : > { %1265 = vmatprep.subr.bf16.mxu1 %v1667_v0  ;;  %1267 = vmatprep.mubr.msk.bf16.mxu1 %vm1668_vm0, %v1667_v0  ;;  %v447_v4 = vld [vmem:[%s389_s14] sm:$0xf]  ;;  %v1209_v17 = vld [vmem:[%s1902_s29 + $0x4] sm:$0xf]  ;;  %v1215_v21 = vld [vmem:[%s1902_s29 + $0x8] sm:$0xf] }
  0x7a   : > { %1260 = vmatpush3.bf16.xpose.msra.mxu0 %v457_v2  ;;  %v448_v5 = vunpack.c.l.bf16 %v447_v4  ;;  %v451_v12 = vld [vmem:[%s1909_s17] sm:$0xf]  ;;  %v571_v20 = vsel %vm452_vm1, %v1209_v17, 0  ;;  %v1208_v22 = vld [vmem:[%s1895_s23 + $0x4] sm:$0xf]  ;;  %v690_v23 = vsel %vm452_vm1, %v1215_v21, 0 }
  0x7b   : > { %1277 = vmatprep.subr.bf16.mxu0 %v1667_v0  ;;  %v514_v13 = vsel %vm512_vm2, %v451_v12, 0  ;;  %v1221_v24 = vld [vmem:[%s1902_s29 + $0xc] sm:$0xf]  ;;  %v1214_v25 = vld [vmem:[%s1895_s23 + $0x8] sm:$0xf]  ;;  %s1669_s27 = smov 8  }
  0x7c   : > { %1266 = vmatpush3.bf16.msra.mxu1 %v514_v13  ;;  %v809_v26 = vsel %vm452_vm1, %v1221_v24, 0  ;;  %v1220_v27 = vld [vmem:[%s1895_s23 + $0xc] sm:$0xf]  ;;  %v1210_v50 = vld [vmem:[%s1909_s17 + $0x4] sm:$0xf]  ;;  %vm445_vm4 = vcmask 261120  }
  0x7d   : > { %1271 = vmatprep.subr.bf16.mxu1 %v1667_v0  ;;  %v627_v51 = vsel %vm512_vm2, %v1210_v50, 0  ;;  %v1216_v59 = vld [vmem:[%s1909_s17 + $0x8] sm:$0xf]  ;;  %446 = vst.msk [vmem:[#allocation2] sm:$0xff] %vm445_vm4, %v1667_v0  ;;  %s1670_s7 = smov 16   ;;  %s1671_s20 = smov 24  }
  0x7e   : > { %v746_v2 = vsel %vm512_vm2, %v1216_v59, 0  ;;  %vm678_vm5 = vcmask 126016   ;;  %vm797_vm6 = vcmask 191616   ;;  %vm916_vm7 = vcmask 257216   ;;  %s1205_s9 = sshll.u32 %s1891_s30, 3  ;;  %s1231_s1 = sshll.u32 %s1650_s24, 7 }
  0x7f   : > { %s436_s6 = scalar_lea.vmem [#allocation13], %s1205_s9  ;;  %s2083_s4 = sld [smem:[#allocation26_spill]] }
  0x80   : > { %s1013_s21 = sshll.u32 %s436_s6, 4  ;;  %s999_s23 = scalar_lea.sflag [#allocation6], %s1891_s30  ;;  %s1014_s21 = int_to_ptr.vmem [resolvable:$true] %s1013_s21 }
  0x81   : > { %1262 = vmatmul.mubr.msk.bf16.vlgmr.msra.gmra.mxu0 %vm452_vm1, %v449_v3  ;;  %v1222_v3 = vld [vmem:[%s1909_s17 + $0xc] sm:$0xf]  ;;  %s1566_s13 = scalar_lea.vmem %s1014_s21, 128  ;;  %s1672_s10 = smov [#allocation13]  }
  0x82   : > { %1279 = vmatprep.mubr.msk.bf16.mxu0 %vm1668_vm0, %v1667_v0  ;;  %1278 = vmatpush3.bf16.msra.mxu0 %v627_v51  ;;  %v1229_v51 = vld [vmem:[%s2045_s5] ss:$0 sm:$0xff]  ;;  %p1567_p7 = scmp.ne.s32.totalorder %s1014_s21, %s1566_s13  ;;  %s1570_s29 = sshll.u32 %s1672_s10, 4  ;;  %s1571_s29 = int_to_ptr.vmem [resolvable:$false] %s1570_s29 }
  0x83   : > { %1289 = vmatprep.subr.bf16.mxu0 %v1667_v0  ;;  %s1572_s24 = scalar_lea.vmem %s1571_s29, 256  ;;  %p1573_p2 = scmp.lt.s32.totalorder %s1014_s21, %s1571_s29 }
  0x84   : > { %p1568_p5 = pnand %p1567_p7, %p1760_p8  ;;  %p1574_p6 = scmp.lt.s32.totalorder %s1572_s24, %s1566_s13 }
  0x85   : > { %s1011_s18 = scalar_lea.hbm %s2083_s4, %s1231_s1 }
  0x86   : > { %p1569_p4 = pneg %p1568_p5  ;;  %p1575_p10 = por %p1574_p6, %p1573_p2 }
  0x88   : > { %p1576_p11 = pnand %p1575_p10, %p1569_p4 }
 0x141   : > { %v493_v6 = vpop.f32.mrf.mxu0 }
 0x142   : > { %v494_v7 = vadd.f32 %v493_v6, %v448_v5 }
 0x143   : > { %v1263_v8 = vpop.f32.mrf.mxu0 }
 0x144   : > { %v499_v9 = vsel %vm452_vm1, %v494_v7, -inf }
 0x145   : > { %v496_v10 = vpop.f32.mrf.mxu0  ;;  %500 = vmax.xlane.f32.xlu0 %v499_v9 }
 0x147   : > { %v1264_v11 = vpop.f32.mrf.mxu0 }
 0x1ce   : > { %v501_v14 = vpop.xlane.xlu0 %500 }
 0x1cf   : > { %v502_v15 = vsub.f32 %v494_v7, %v501_v14  ;;  %v865_v7 = vsel %vm512_vm2, %v1222_v3, 0 }
 0x1d1   : > { %v503_v16 = vmul.f32 1.442695, %v502_v15 }
 0x1d3   : > { %1412 = vpow2.f32 %v503_v16 }
 0x1e0   : > { %v1937_v18 = vpop.eup %1412 }
 0x1e1   : > { %v508_v19 = vpack.c.bf16 %v1937_v18, %v1937_v18  ;;  %v505_v8 = vsel %vm452_vm1, %v1937_v18, 0.0 }
 0x1e3   : > { %1268 = vmatmul.mubr.msk.bf16.vlgmr.msra.gmra.mxu1 %vm452_vm1, %v508_v19 }
 0x1e4   : > { %1272 = vmatpush3.bf16.xpose.msra.mxu1 %v571_v20  ;;  %1273 = vmatprep.mubr.msk.bf16.mxu1 %vm1668_vm0, %v1667_v0 }
 0x1e5   : > { %1283 = vmatprep.subr.bf16.mxu1 %v1667_v0 }
 0x1eb   : > { %1274 = vmatmul.mubr.msk.bf16.vlgmr.msra.gmra.mxu1 %vm452_vm1, %v1208_v22 }
 0x1ec   : > { %1284 = vmatpush3.bf16.xpose.msra.mxu1 %v690_v23  ;;  %1285 = vmatprep.mubr.msk.bf16.mxu1 %vm1668_vm0, %v1667_v0 }
 0x1ed   : > { %1295 = vmatprep.subr.bf16.mxu1 %v1667_v0 }
 0x1f3   : > { %1286 = vmatmul.mubr.msk.bf16.vlgmr.msra.gmra.mxu1 %vm452_vm1, %v1214_v25 }
 0x1f4   : > { %1296 = vmatpush3.bf16.xpose.msra.mxu1 %v809_v26  ;;  %1297 = vmatprep.mubr.msk.bf16.mxu1 %vm1668_vm0, %v1667_v0  ;;  %v1410_v26 = vld [vmem:[#allocation12 + $0x8] sm:$0xff]  }
 0x1f5   : > { %1307 = vmatprep.subr.bf16.mxu1 %v1667_v0 }
 0x1fb   : > { %1298 = vmatmul.mubr.msk.bf16.vlgmr.msra.gmra.mxu1 %vm452_vm1, %v1220_v27 }
 0x1fc   : > { %1311 = vmatprep.mubr.msk.bf16.mxu1 %vm1668_vm0, %v1667_v0  ;;  %1308 = vmatpush3.bf16.msra.mxu1 %v1410_v26 }
 0x1fd   : > { %1309 = vmatprep.subr.bf16.mxu1 %v1667_v0 }
 0x2a3   : > { %v1964_v28 = vpop.f32.mrf.mxu1 }
 0x2a5   : > { %v1269_v29 = vpop.f32.mrf.mxu1 }
 0x2a7   : > { %v553_v30 = vpop.f32.mrf.mxu1 }
 0x2a8   : > { %v1411_v30 = vld [vmem:[#allocation12] sm:$0xff]  }
 0x2a9   : > { %v1270_v31 = vpop.f32.mrf.mxu1  ;;  %1310 = vmatpush3.bf16.msra.mxu1 %v1411_v30 }
 0x2ab   : > { %v607_v32 = vpop.f32.mrf.mxu1 }
 0x2ac   : > { %v608_v33 = vadd.f32 %v607_v32, %v448_v5 }
 0x2ad   : > { %v1275_v34 = vpop.f32.mrf.mxu1 }
 0x2ae   : > { %v613_v35 = vsel %vm452_vm1, %v608_v33, -inf }
 0x2af   : > { %614 = vmax.xlane.f32.xlu0 %v613_v35  ;;  %v610_v36 = vpop.f32.mrf.mxu1 }
 0x2b1   : > { %v1276_v37 = vpop.f32.mrf.mxu1 }
 0x2b3   : > { %v726_v38 = vpop.f32.mrf.mxu1 }
 0x2b4   : > { %v727_v39 = vadd.f32 %v726_v38, %v448_v5 }
 0x2b5   : > { %v1287_v40 = vpop.f32.mrf.mxu1 }
 0x2b6   : > { %v732_v41 = vsel %vm452_vm1, %v727_v39, -inf }
 0x2b7   : > { %733 = vmax.xlane.f32.xlu1 %v732_v41  ;;  %v729_v42 = vpop.f32.mrf.mxu1 }
 0x2b9   : > { %v1288_v43 = vpop.f32.mrf.mxu1 }
 0x2bb   : > { %v845_v44 = vpop.f32.mrf.mxu1 }
 0x2bc   : > { %v846_v45 = vadd.f32 %v845_v44, %v448_v5 }
 0x2bd   : > { %v1299_v46 = vpop.f32.mrf.mxu1 }
 0x2be   : > { %v851_v47 = vsel %vm452_vm1, %v846_v45, -inf }
 0x2bf   : > { %852 = vmax.xlane.f32.xlu1 %v851_v47  ;;  %v848_v48 = vpop.f32.mrf.mxu1 }
 0x2c1   : > { %v1300_v49 = vpop.f32.mrf.mxu1 }
 0x338   : > { %v615_v52 = vpop.xlane.xlu0 %614 }
 0x339   : > { %v616_v53 = vsub.f32 %v608_v33, %v615_v52 }
 0x33b   : > { %v617_v54 = vmul.f32 1.442695, %v616_v53 }
 0x33d   : > { %1414 = vpow2.f32 %v617_v54 }
 0x340   : > { %v734_v55 = vpop.xlane.xlu1 %733 }
 0x341   : > { %v735_v56 = vsub.f32 %v727_v39, %v734_v55 }
 0x343   : > { %v736_v57 = vmul.f32 1.442695, %v735_v56 }
 0x345   : > { %1416 = vpow2.f32 %v736_v57 }
 0x348   : > { %v853_v58 = vpop.xlane.xlu1 %852 }
 0x349   : > { %v854_v60 = vsub.f32 %v846_v45, %v853_v58  ;;  %v918_v45 = vld [vmem:[#allocation2] sm:$0xff] }
 0x34a   : > { %v1415_v61 = vpop.eup %1414 }
 0x34b   : > { %v855_v62 = vmul.f32 1.442695, %v854_v60  ;;  %v619_v63 = vsel %vm452_vm1, %v1415_v61, 0.0  ;;  %v622_v1 = vpack.c.bf16 %v1415_v61, %v1415_v61 }
 0x34c   : > { %620 = vadd.xlane.f32.xlu0 %v619_v63 }
 0x34d   : > { %1418 = vpow2.f32 %v855_v62  ;;  %1280 = vmatmul.mubr.msk.bf16.vlgmr.msra.gmra.mxu0 %vm452_vm1, %v622_v1 }
 0x34e   : > { %1290 = vmatpush3.bf16.msra.mxu0 %v746_v2  ;;  %1291 = vmatprep.mubr.msk.bf16.mxu0 %vm1668_vm0, %v1667_v0 }
 0x34f   : > { %1301 = vmatprep.subr.bf16.mxu0 %v1667_v0 }
 0x352   : > { %v1417_v4 = vpop.eup %1416 }
 0x353   : > { %v738_v5 = vsel %vm452_vm1, %v1417_v4, 0.0  ;;  %v741_v6 = vpack.c.bf16 %v1417_v4, %v1417_v4 }
 0x354   : > { %739 = vadd.xlane.f32.xlu1 %v738_v5 }
 0x355   : > { %1292 = vmatmul.mubr.msk.bf16.vlgmr.msra.gmra.mxu0 %vm452_vm1, %v741_v6 }
 0x356   : > { %1302 = vmatpush3.bf16.msra.mxu0 %v865_v7  ;;  %1303 = vmatprep.mubr.msk.bf16.mxu0 %vm1668_vm0, %v1667_v0 }
 0x358   : > { %506 = vadd.xlane.f32.xlu1 %v505_v8 }
 0x35a   : > { %v1419_v9 = vpop.eup %1418 }
 0x35b   : > { %v857_v10 = vsel %vm452_vm1, %v1419_v9, 0.0  ;;  %v860_v11 = vpack.c.bf16 %v1419_v9, %v1419_v9 }
 0x35c   : > { %858 = vadd.xlane.f32.xlu0 %v857_v10 }
 0x35d   : > { %1304 = vmatmul.mubr.msk.bf16.vlgmr.msra.gmra.mxu0 %vm452_vm1, %v860_v11 }
 0x3d5   : > { %v621_v17 = vpop.xlane.xlu0 %620 }
 0x3dd   : > { %v740_v12 = vpop.xlane.xlu1 %739 }
 0x3e1   : > { %v507_v13 = vpop.xlane.xlu1 %506 }
 0x3e2   : > { %1420 = vrcp.f32 %v507_v13 }
 0x3e3   : > { %1422 = vrcp.f32 %v621_v17 }
 0x3e4   : > { %1424 = vrcp.f32 %v740_v12 }
 0x3e5   : > { %v859_v19 = vpop.xlane.xlu0 %858 }
 0x3e6   : > { %1426 = vrcp.f32 %v859_v19 }
 0x3ef   : > { %v1421_v14 = vpop.eup %1420 }
 0x3f0   : > { %v557_v15 = vmul.f32 %v1421_v14, %v1964_v28  ;;  %v1423_v18 = vpop.eup %1422 }
 0x3f1   : > { %v1425_v27 = vpop.eup %1424 }
 0x3f2   : > { %v558_v16 = vpack.c.bf16 %v557_v15, %v557_v15 }
 0x3f3   : > { %v1427_v35 = vpop.eup %1426 }
 0x3f4   : > { %560 = vst.msk [vmem:[#allocation3] sm:$0xf] %vm559_vm3, %v558_v16 }
 0x40d   : > { %v663_v20 = vpop.f32.mrf.mxu0 }
 0x40e   : > { %v670_v21 = vmul.f32 %v1423_v18, %v663_v20 }
 0x40f   : > { %v1281_v22 = vpop.f32.mrf.mxu0 }
 0x410   : > { %v1237_v23 = vpack.c.bf16 %v670_v21, %v670_v21 }
 0x411   : > { %v666_v24 = vpop.f32.mrf.mxu0 }
 0x412   : > { %675 = vrot.lane.b32.xlu0 %v1237_v23, %s1669_s27 }
 0x413   : > { %v1282_v25 = vpop.f32.mrf.mxu0 }
 0x415   : > { %v782_v28 = vpop.f32.mrf.mxu0 }
 0x416   : > { %v789_v29 = vmul.f32 %v1425_v27, %v782_v28 }
 0x417   : > { %v1293_v31 = vpop.f32.mrf.mxu0 }
 0x418   : > { %v1238_v32 = vpack.c.bf16 %v789_v29, %v789_v29 }
 0x419   : > { %v785_v33 = vpop.f32.mrf.mxu0 }
 0x41a   : > { %794 = vrot.lane.b32.xlu1 %v1238_v32, %s1670_s7 }
 0x41b   : > { %v1294_v34 = vpop.f32.mrf.mxu0 }
 0x41d   : > { %v901_v36 = vpop.f32.mrf.mxu0 }
 0x41e   : > { %v908_v37 = vmul.f32 %v1427_v35, %v901_v36 }
 0x41f   : > { %v1305_v38 = vpop.f32.mrf.mxu0 }
 0x420   : > { %v1239_v39 = vpack.c.bf16 %v908_v37, %v908_v37 }
 0x421   : > { %v904_v40 = vpop.f32.mrf.mxu0 }
 0x422   : > { %913 = vrot.lane.b32.xlu1 %v1239_v39, %s1671_s20 }
 0x423   : > { %v1306_v41 = vpop.f32.mrf.mxu0 }
 0x484   : > { %v676_v42 = vpop.permute.xlu0 %675 }
 0x485   : > { %679 = vst.msk [vmem:[#allocation3] sm:$0xf] %vm678_vm5, %v676_v42 }
 0x48c   : > { %v795_v0 = vpop.permute.xlu1 %794 }
 0x48d   : > { %798 = vst.msk [vmem:[#allocation3] sm:$0xf] %vm797_vm6, %v795_v0 }
 0x494   : > { %v914_v43 = vpop.permute.xlu1 %913 }
 0x495   : > { %917 = vst.msk [vmem:[#allocation3] sm:$0xf] %vm916_vm7, %v914_v43 }
 0x49c   : > { %v919_v44 = vld [vmem:[#allocation3] sm:$0xf] }
 0x49d   : > { %1312 = vmatmul.mubr.msk.bf16.vlgmr.msra.gmra.mxu1 %vm445_vm4, %v919_v44 }
 0x55d   : > { %v977_v46 = vpop.f32.mrf.mxu1 }
 0x55e   : > { %v983_v47 = vadd.f32 %v977_v46, %v918_v45 }
 0x55f   : > { %v1313_v48 = vpop.f32.mrf.mxu1 }
 0x560   : > { %984 = vst.msk [vmem:[#allocation2] sm:$0xff] %vm445_vm4, %v983_v47 }
 0x561   : > { %v980_v49 = vpop.f32.mrf.mxu1 }
 0x563   : > { %v1314_v50 = vpop.f32.mrf.mxu1 }
 0x567   : > { %v988_v52 = vld [vmem:[#allocation2] sm:$0xff] }
 0x568   : > { %v996_v53 = vadd.f32 %v1229_v51, %v988_v52 }
 0x56a   : > { %997 = vst.msk [vmem:[%s436_s6] sm:$0xff] %vm445_vm4, %v996_v53 }
 0x56b   : > { %1579 = shalt.err (!%p1576_p11)
}
 0x56c   : > { %s1580_s11 = scalar_lea.hbm %s1011_s18, 128  ;;  %s1584_s12 = scalar_lea.hbm %s2083_s4, 256 }
 0x56d   : > { %p1581_p13 = scmp.ne.s32.totalorder %s1011_s18, %s1580_s11  ;;  %p1585_p1 = scmp.lt.s32.totalorder %s1011_s18, %s2083_s4 }
 0x56e   : > { %p1586_p12 = scmp.lt.s32.totalorder %s1584_s12, %s1580_s11 }
 0x56f   : > { %p1582_p3 = pnand %p1581_p13, %p1760_p8 }
 0x570   : > { %p1587_p9 = por %p1586_p12, %p1585_p1 }
 0x571   : > { %p1583_p0 = pneg %p1582_p3 }
 0x573   : > { %p1588_p7 = pnand %p1587_p9, %p1583_p0 }
 0x575   : > { %1591 = shalt.err (!%p1588_p7)
}
 0x576   : > { %1327 = dma.vmem_to_hbm [thread:$0]  (%p1760_p8), %s1014_s21, 128, %s1011_s18, %s999_s23  }
 0x577 PF: > { %s2084_s7 = sld [smem:[#allocation19_spill]]  ;;  %p2087_p4 = scmp.ge.s32.totalorder %s1658_s26, 2 }
 0x578   : > { %s2085_s20 = sld [smem:[#allocation21_spill]] }
 0x57d   : > { %s1025_s9 = sand.u32 1, %s2084_s7  }
 0x57e   : > { %p2086_p5 = scmp.ne.s32.totalorder %s2085_s20, 0  ;;  %s1026_s19 = scalar_lea.sflag [#allocation6], %s1025_s9 }
 0x580   : > { %p1347_p2 = pnand %p2087_p4, %p2086_p5 }
 0x582   : > { %p1348_p6 = pneg %p1347_p2 }
 0x584   : > { %1633 = dma.done.wait (%p1348_p6), %s1026_s19, 128  }
 0x585   : > { %1635 = vsyncadd (%p1348_p6), %s1026_s19, 4294967168  ;;  %s28_s26 = sadd.s32 1, %s1658_s26   ;;  %s2088_s28 = sld [smem:[#allocation20_spill]] }
 0x586   : > { %p25_p10 = scmp.ge.s32.totalorder %s28_s26, 4   ;;  %s2089_s23 = sld [smem:[#allocation23_spill]] }
 0x587   : > { %s2090_s8 = sld [smem:[#allocation22_spill]]  ;;  %s2091_s21 = smov %s1642_s22 }
 0x588   : > { %s2093_s24 = smov %s1654_s25 }
 0x589   :  { %27 = sbr.rel (!%p25_p10) target bundleno = 14 (0xe), region = 148 }
 0x58b   : > { %s2092_s22 = smov %s2088_s28 }
 0x58d   : > { %s2094_s25 = smov %s2090_s8 }
 0x58e   :  { %1031 = vsyncpa [#allocation5], 1 }
 0x58f   :  { %1033 = vsyncpa [#allocation5 + $0x1], 1 }
 0x590   :  { %1034 = vsyncpa [#allocation8], 1 }
 0x591   :  { %1036 = vsyncpa [#allocation8 + $0x1], 1 }
 0x592   :  { %1037 = vsyncpa [#allocation11], 1 }
 0x593   :  { %1039 = vsyncpa [#allocation11 + $0x1], 1 }
 0x594   :  { %1040 = vsyncpa [#allocation6], 1 }
 0x595   :  { %1042 = vsyncpa [#allocation6 + $0x1], 1 }

</bundles_post_ra>
